<compile_context>
chip_gen: v6e
topology: v6e:2x2x1
jax: 0.10.0
libtpu: 0.0.40
codegen_flags: <defaults>
</compile_context>

<pallas_src>
import functools

import jax
import jax.numpy as jnp
from jax.experimental import pallas as pl
from jax.experimental.pallas import tpu as pltpu


def _rmsnorm_kernel(x_ref, w_ref, o_ref, *, eps):
    # Upcast to f32 (matches `hidden_states.to(torch.float32)` in the module).
    x = x_ref[...].astype(jnp.float32)                 # (tile_rows, hidden)
    w = w_ref[...].astype(jnp.float32)                 # (1, hidden)
    var = jnp.mean(x * x, axis=-1, keepdims=True)      # (tile_rows, 1)
    inv = jax.lax.rsqrt(var + eps)                     # (tile_rows, 1)
    # Single fused scale, cast straight into the output tile.  (Kept in f32 to
    # match the reference numerics; on v7x only revisit if the bundle dump
    # shows the VALU slot — not HBM — is the binder.)
    o_ref[...] = (x * (inv * w)).astype(o_ref.dtype)


def _tpu_vmem_params():
    """(tile_sizing_budget_bytes, vmem_limit_bytes, num_tensorcores)."""
    phys = None
    try:
        info = pltpu.get_tpu_info()
        phys = getattr(info, "vmem_capacity_bytes", None)
    except Exception:
        phys = None
    if not phys or phys <= 0:
        # Unknown: assume the smallest-VMEM generation (v7x-class, 64 MiB/TC).
        phys = 64 * 1024 * 1024
    if phys >= 100 * 1024 * 1024:
        # 128 MiB parts (v5e / v6e): single TensorCore, generous scoped VMEM.
        return 56 * 1024 * 1024, 96 * 1024 * 1024, 1
    # 64 MiB-per-TC parts (v7x-class): leave room for Mosaic internal scratch,
    # the double-buffered weight block and DMA semaphores; 2 TCs share the grid.
    return 24 * 1024 * 1024, 40 * 1024 * 1024, 2


def _round_up(x, m):
    return -(-x // m) * m


def _choose_tile_rows(rows, hidden, itemsize, budget_bytes, num_cores):
    """Row tile as large as the VMEM budget allows, while keeping the grid deep
    enough that the auto double-buffer has a next block to prefetch and (on
    2-TC parts) both cores get work."""
    # Sublane packing granule: 8 rows for 32-bit, 16 for bf16, 32 for 8-bit.
    granule = 8 if itemsize >= 4 else (16 if itemsize == 2 else 32)
    # Per-row VMEM footprint: double-buffered input + output plus roughly two
    # live full-width f32 intermediates inside the body.
    bytes_per_row = hidden * (4 * itemsize + 8)
    t_fit = max(granule, (budget_bytes // max(bytes_per_row, 1)) // granule * granule)
    rows_g = _round_up(rows, granule)
    n_natural = -(-rows_g // t_fit)          # grid depth at the VMEM-fit tile

    if n_natural <= 1:
        # Whole array fits one tile: splitting on 1-TC parts only adds
        # ~0.35us/step of grid overhead; on 2-TC parts give each core a block.
        if num_cores <= 1 or rows_g <= granule:
            return rows_g
        target_blocks = num_cores
    elif n_natural <= 2:
        target_blocks = max(2, num_cores)
    else:
        # >= 4 blocks: >= 2 per core on v7x and always one block ahead so the
        # DMA of block i+1 overlaps compute/writeback of block i.
        target_blocks = max(4, 2 * num_cores)

    per_block = max(granule, _round_up(-(-rows_g // target_blocks), granule))
    return max(granule, min(t_fit, per_block, rows_g))


def rmsnorm(x, weight, eps=1e-05, *, tile_rows=None):
    """Pallas RMSNorm. x: (..., hidden); weight: (hidden,). Returns x.dtype."""
    orig_shape = x.shape
    hidden = orig_shape[-1]
    rows = 1
    for d in orig_shape[:-1]:
        rows *= d
    x2 = x.reshape(rows, hidden)
    w2 = weight.reshape(1, hidden)

    itemsize = jnp.dtype(x.dtype).itemsize
    budget, vmem_limit, num_cores = _tpu_vmem_params()
    if tile_rows is None:
        tile_rows = _choose_tile_rows(rows, hidden, itemsize, budget, num_cores)

    # Ragged last block (rows % tile_rows != 0) is handled by Pallas OOB
    # masking — no jnp.pad copy of the input or slice copy of the output.
    # NOTE: the padded rows read undefined data (may yield Inf/NaN before the
    # masked writeback); safe while the kernel stays purely row-local.
    grid = (pl.cdiv(rows, tile_rows),)

    w_itemsize = jnp.dtype(weight.dtype).itemsize
    cost = pl.CostEstimate(
        flops=4 * rows * hidden,                 # square, row-sum, two scale muls
        transcendentals=rows,                    # one rsqrt per row
        bytes_accessed=2 * rows * hidden * itemsize + hidden * w_itemsize,
    )

    out = pl.pallas_call(
        functools.partial(_rmsnorm_kernel, eps=eps),
        out_shape=jax.ShapeDtypeStruct((rows, hidden), x.dtype),
        grid_spec=pltpu.PrefetchScalarGridSpec(
            num_scalar_prefetch=0,
            grid=grid,
            in_specs=[
                pl.BlockSpec((tile_rows, hidden), lambda i: (i, 0)),
                # Constant index map -> the tiny weight block is only fetched
                # once.  TODO(synk): pipeline_mode=pl.Buffered(1) would drop
                # its second buffer (hidden*itemsize bytes); left at the
                # default for lowering portability.
                pl.BlockSpec((1, hidden), lambda i: (0, 0)),
            ],
            out_specs=pl.BlockSpec((tile_rows, hidden), lambda i: (i, 0)),
        ),
        compiler_params=pltpu.CompilerParams(
            # "parallel" lets the 1-D rows grid shard across both v7x
            # TensorCores; if xprof ever shows one idle core, switch to
            # pltpu.CORE_PARALLEL (explicit per-core codegen split).
            dimension_semantics=("parallel",),
            vmem_limit_bytes=vmem_limit,
        ),
        cost_estimate=cost,
    )(x2, w2)

    return out.reshape(orig_shape)


def rmsnorm_ref(x, weight, eps=1e-05):
    xf = x.astype(jnp.float32)
    var = jnp.mean(xf * xf, axis=-1, keepdims=True)
    y = xf * jax.lax.rsqrt(var + eps)
    return (weight.astype(jnp.float32) * y).astype(x.dtype)


if __name__ == "__main__":
    key = jax.random.PRNGKey(0)
    k1, k2 = jax.random.split(key)

    # Case 1: bf16, lane-dense hidden, rows divide the tile exactly.
    batch, seq, hidden = 2, 8, 128
    x1 = jax.random.normal(k1, (batch, seq, hidden), dtype=jnp.bfloat16)
    w1 = jnp.ones((hidden,), dtype=jnp.float32)  # PyTorch init: ones
    out1 = jax.block_until_ready(rmsnorm(x1, w1, eps=1e-05))
    ref1 = rmsnorm_ref(x1, w1, eps=1e-05)
    assert out1.shape == x1.shape and out1.dtype == x1.dtype
    assert jnp.allclose(out1.astype(jnp.float32), ref1.astype(jnp.float32),
                        atol=1e-2, rtol=1e-2)

    # Case 2: f32, ragged rows (15 rows -> possible partial OOB last block),
    # non-trivial weight.
    x2 = jax.random.normal(k2, (3, 5, 256), dtype=jnp.float32)
    w2 = 1.0 + 0.01 * jnp.arange(256, dtype=jnp.float32)
    out2 = jax.block_until_ready(rmsnorm(x2, w2, eps=1e-05))
    ref2 = rmsnorm_ref(x2, w2, eps=1e-05)
    assert out2.shape == x2.shape and out2.dtype == x2.dtype
    assert jnp.allclose(out2, ref2, atol=1e-4, rtol=1e-4)

    print("KERNEL_OK")
</pallas_src>

<mosaic_0001>
module attributes {stable_mosaic.version = 11 : i64} {
  func.func @_rmsnorm_kernel(%arg0: i32, %arg1: memref<16x128xbf16, #tpu.memory_space<vmem>>, %arg2: memref<1x128xf32, #tpu.memory_space<vmem>>, %arg3: memref<16x128xbf16, #tpu.memory_space<vmem>>) attributes {dimension_semantics = [#tpu.dimension_semantics<parallel>], iteration_bounds = array<i64: 1>, scalar_prefetch = 0 : i64, scratch_operands = 0 : i64, tpu.core_type = #tpu.core_type<tc>, window_params = [{transform_indices = @transform_0, window_bounds = array<i64: 16, 128>}, {pipeline_mode = #tpu.pipeline_mode<synchronous>, transform_indices = @transform_1, window_bounds = array<i64: 1, 128>}, {transform_indices = @transform_2, window_bounds = array<i64: 16, 128>}]} {
    %c0 = arith.constant 0 : index
    %c0_0 = arith.constant 0 : index
    %0 = vector.load %arg1[%c0, %c0_0] : memref<16x128xbf16, #tpu.memory_space<vmem>>, vector<16x128xbf16>
    %1 = arith.extf %0 : vector<16x128xbf16> to vector<16x128xf32>
    %c0_1 = arith.constant 0 : index
    %c0_2 = arith.constant 0 : index
    %2 = vector.load %arg2[%c0_1, %c0_2] : memref<1x128xf32, #tpu.memory_space<vmem>>, vector<1x128xf32>
    %3 = arith.mulf %1, %1 : vector<16x128xf32>
    %cst = arith.constant dense<0.000000e+00> : vector<16xf32>
    %4 = vector.multi_reduction <add>, %3, %cst [1] : vector<16x128xf32> to vector<16xf32>
    %5 = vector.shape_cast %4 : vector<16xf32> to vector<16x1xf32>
    %cst_3 = arith.constant 1.280000e+02 : f32
    %6 = vector.broadcast %cst_3 : f32 to vector<16x1xf32>
    %7 = arith.divf %5, %6 : vector<16x1xf32>
    %cst_4 = arith.constant 9.99999974E-6 : f32
    %8 = vector.broadcast %cst_4 : f32 to vector<16x1xf32>
    %9 = arith.addf %7, %8 : vector<16x1xf32>
    %10 = math.rsqrt %9 : vector<16x1xf32>
    %11 = vector.broadcast %10 : vector<16x1xf32> to vector<16x128xf32>
    %12 = vector.broadcast %2 : vector<1x128xf32> to vector<16x128xf32>
    %13 = arith.mulf %11, %12 : vector<16x128xf32>
    %14 = arith.mulf %1, %13 : vector<16x128xf32>
    %15 = arith.truncf %14 : vector<16x128xf32> to vector<16x128xbf16>
    %c0_5 = arith.constant 0 : index
    %c0_6 = arith.constant 0 : index
    %16 = vector.load %arg3[%c0_5, %c0_6] : memref<16x128xbf16, #tpu.memory_space<vmem>>, vector<16x128xbf16>
    tpu.vector_store %arg3[%c0_5, %c0_6], %15 {strides = array<i32>} : memref<16x128xbf16, #tpu.memory_space<vmem>>, vector<16x128xbf16>,
    return
  }
  func.func @transform_0(%arg0: i32) -> (i32, i32) {
    %c0_i32 = arith.constant 0 : i32
    %c0_i32_0 = arith.constant 0 : i32
    return %arg0, %c0_i32 : i32, i32
  }
  func.func @transform_1(%arg0: i32) -> (i32, i32) {
    %c0_i32 = arith.constant 0 : i32
    %c0_i32_0 = arith.constant 0 : i32
    %c0_i32_1 = arith.constant 0 : i32
    return %c0_i32, %c0_i32_0 : i32, i32
  }
  func.func @transform_2(%arg0: i32) -> (i32, i32) {
    %c0_i32 = arith.constant 0 : i32
    %c0_i32_0 = arith.constant 0 : i32
    return %arg0, %c0_i32 : i32, i32
  }
}

</mosaic_0001>

<bundles_post_ra>
// kernel: tpu_custom_call.1
= control target key start
LH: loop header
LB: loop body
LE: loop exit
PB: predicated region body
PF: predicated region fallthrough
CT: control target
= control target key end

     0   :  { %7 = vsyncpa [#allocation3], 0  ;;  %s181_s0 = inlined_call_operand.hbm [shape: bf16[16,128], index: 0, kind: input, shape index: {}]   ;;  %s182_s1 = inlined_call_operand.vmem [shape: f32[1,128], index: 1, kind: input, shape index: {}]   ;;  %s183_s2 = inlined_call_operand.hbm [shape: bf16[16,128], index: 2, kind: output, shape index: {}]  }
   0x1   :  { %8 = vsyncpa [#allocation4], 0  ;;  %s147_s9 = smov [#allocation2]  }
   0x2   :  { %s14_s10 = sshll.u32 %s147_s9, 4  ;;  %s15_s10 = int_to_ptr.vmem [resolvable:$true] %s14_s10 }
   0x3   :  { %s111_s11 = scalar_lea.vmem %s15_s10, 128  ;;  %p116_p1 = scmp.lt.s32.totalorder %s15_s10, %s15_s10 }
   0x4   :  { %p112_p0 = scmp.ne.s32.totalorder %s15_s10, %s111_s11  ;;  %p117_p2 = scmp.lt.s32.totalorder %s111_s11, %s111_s11 }
   0x6   :  { %p118_p3 = por %p117_p2, %p116_p1 }
   0x8   :  { %p119_p4 = pnand %p118_p3, %p112_p0 }
   0xa   :  { %122 = shalt.err (!%p119_p4)
}
   0xb   :  { %s148_s12 = smov 64   ;;  %s149_s13 = smov 4  }
   0xc   :  { %20 = dma.hbm_to_vmem [thread:$0]  %s181_s0, 128, %s15_s10, [#allocation3], %s148_s12, %s148_s12, %s149_s13  }
   0xd   :  { %143 = dma.done.wait [#allocation3], 128  }
   0xe   :  { %144 = vsyncadd [#allocation3], 4294967168  ;;  %v87_v0 = vld [vmem:[#allocation2] sm:$0xff]   ;;  %s150_s17 = smov [#allocation5]  }
   0xf   :  { %v88_v1 = vunpack.c.l.bf16 %v87_v0  ;;  %v89_v2 = vunpack.c.h.bf16 %v87_v0  ;;  %v81_v12 = vld [vmem:[%s182_s1] ss:$0 sm:$0xff]  ;;  %s69_s18 = sshll.u32 %s150_s17, 4  ;;  %s70_s18 = int_to_ptr.vmem [resolvable:$true] %s69_s18 }
  0x10   :  { %s123_s19 = scalar_lea.vmem %s70_s18, 128  ;;  %p128_p6 = scmp.lt.s32.totalorder %s70_s18, %s70_s18 }
  0x11   :  { %v31_v3 = vmul.f32 %v88_v1, %v88_v1  ;;  %v32_v4 = vmul.f32 %v89_v2, %v89_v2  ;;  %p124_p5 = scmp.ne.s32.totalorder %s70_s18, %s123_s19  ;;  %p129_p7 = scmp.lt.s32.totalorder %s123_s19, %s123_s19 }
  0x13   :  { %33 = vadd.xlane.f32.xlu0 %v31_v3  ;;  %p130_p8 = por %p129_p7, %p128_p6 }
  0x15   :  { %p131_p9 = pnand %p130_p8, %p124_p5 }
  0x17   :  { %35 = vadd.xlane.f32.xlu0 %v32_v4 }
  0x9c   :  { %v34_v5 = vpop.xlane.xlu0 %33 }
  0x9d   :  { %v38_v6 = vmul.f32 0.0078125, %v34_v5 }
  0x9f   :  { %v40_v7 = vadd.f32 1e-05, %v38_v6 }
  0xa0   :  { %v36_v8 = vpop.xlane.xlu0 %35 }
  0xa1   :  { %99 = vrsqrt.f32 %v40_v7  ;;  %v39_v9 = vmul.f32 0.0078125, %v36_v8 }
  0xa3   :  { %v41_v10 = vadd.f32 1e-05, %v39_v9 }
  0xa5   :  { %101 = vrsqrt.f32 %v41_v10 }
  0xae   :  { %v100_v11 = vpop.eup %99 }
  0xaf   :  { %v50_v13 = vmul.f32 %v100_v11, %v81_v12 }
  0xb1   :  { %v52_v16 = vmul.f32 %v88_v1, %v50_v13 }
  0xb2   :  { %v102_v14 = vpop.eup %101 }
  0xb3   :  { %v51_v15 = vmul.f32 %v102_v14, %v81_v12 }
  0xb5   :  { %v53_v17 = vmul.f32 %v89_v2, %v51_v15 }
  0xb7   :  { %v93_v18 = vpack.c.bf16 %v53_v17, %v52_v16 }
  0xb9   :  { %94 = vst [vmem:[#allocation5] sm:$0xff] %v93_v18  }
  0xba   :  { %134 = shalt.err (!%p131_p9)
}
  0xbb   :  { %75 = dma.vmem_to_hbm [thread:$0]  %s70_s18, 128, %s183_s2, [#allocation4], %s148_s12, %s148_s12, %s149_s13  }
  0xbc   :  { %145 = dma.done.wait [#allocation4], 128  }
  0xbd   :  { %146 = vsyncadd [#allocation4], 4294967168 }
  0xbe   :  { %79 = vsyncpa [#allocation3], 1 }
  0xbf   :  { %80 = vsyncpa [#allocation4], 1 }

</bundles_post_ra>
